<compile_context>
chip_gen: v6e
topology: v6e:2x2x1
jax: 0.10.0
libtpu: 0.0.40
codegen_flags: <defaults>
</compile_context>

<pallas_src>
import functools
import math
import random

import jax
import jax.numpy as jnp
from jax.experimental import pallas as pl
from jax.experimental.pallas import tpu as pltpu

RGBPAD = 8              # ToRGB out-channels padded 3 -> 8
TH_MAX = 64             # max output rows per grid step (budget may shrink it)
MAPPING_SLOPE = 512.0   # nn.LeakyReLU(512) in the mapping network
VMEM_BUDGET = 40 << 20  # per-step working-set budget (v7x has 64 MiB physical VMEM)


# ---------------------------------------------------------------------------
# Mapping network: PixelNorm + 8 x (Linear + LeakyReLU(512)), fully fused.
# ---------------------------------------------------------------------------
def _mapping_kernel(x_ref, w_ref, b_ref, o_ref, *, n_layers, slope):
    h = x_ref[...]
    h = h * jax.lax.rsqrt(jnp.mean(h * h, axis=1, keepdims=True) + 1e-8)
    for i in range(n_layers):
        h = jnp.dot(h.astype(jnp.bfloat16), w_ref[i],
                    preferred_element_type=jnp.float32) + b_ref[i][None, :]
        h = jnp.where(h >= 0.0, h, slope * h)
    o_ref[...] = h


def mapping_network(styles, mp):
    m, d = styles.shape
    w = mp["w"].astype(jnp.bfloat16)          # bf16 weights: this kernel is DMA-bound
    n_layers = w.shape[0]
    return pl.pallas_call(
        functools.partial(_mapping_kernel, n_layers=n_layers, slope=MAPPING_SLOPE),
        out_shape=jax.ShapeDtypeStruct((m, d), jnp.float32),
        grid=(1,),
        in_specs=[pl.BlockSpec((m, d), lambda i: (0, 0)),
                  pl.BlockSpec((n_layers, d, d), lambda i: (0, 0, 0)),
                  pl.BlockSpec((n_layers, d), lambda i: (0, 0))],
        out_specs=pl.BlockSpec((m, d), lambda i: (0, 0)),
    )(styles, w, mp["b"])


# ---------------------------------------------------------------------------
# Modulated 3x3 conv kernel (optionally with fused ToRGB second output).
# ---------------------------------------------------------------------------
def _modconv_kernel(*refs, k, th, wout, cout, ppt, slope, fuse_rgb):
    x_ref, halo_ref, taps_ref, sin_ref, osc_ref, noise_ref = refs[:6]
    if fuse_rgb:
        rgbw_ref, rgbs_ref, rgbb_ref, o_ref, rgb_ref = refs[6:]
    else:
        o_ref = refs[6]
        rgb_ref = None

    cin = x_ref.shape[-1]
    tn = o_ref.shape[-1]
    bb = pl.program_id(1)

    # Per-sample modulation: scale the input channels by the style vector (bf16 operands).
    s_in = sin_ref[bb].astype(jnp.bfloat16)          # (cin,)
    x_main = x_ref[0] * s_in                          # (th,   wp, cin) bf16
    x_halo = halo_ref[0] * s_in                        # (k-1,  wp, cin) bf16

    # 3x3 correlation: one dot per kernel row with the kx taps folded into the contraction
    # dim (K = 3*cin) -> 3 accumulator updates instead of 9 f32 RMW passes, no full-tile
    # stitch (halo rows concatenated as values per kernel row).
    acc = None
    for ky in range(k):
        win = x_main if ky == 0 else jnp.concatenate([x_main[ky:], x_halo[:ky]], axis=0)
        xs = jnp.concatenate([win[:, kx:kx + wout, :] for kx in range(k)], axis=-1)
        part = jnp.dot(xs.reshape(th * wout, k * cin), taps_ref[ky],
                       preferred_element_type=jnp.float32)
        acc = part if acc is None else acc + part

    # Demodulation (per out-channel scale, precomputed in plain JAX).
    y = acc.reshape(th, wout, tn) * osc_ref[bb][None, None, :]

    # NoiseInjection (per sub-pixel phase for upsample convs).
    nz = noise_ref[...]                                # (ppt, th, wout) f32
    if ppt == 1:
        y = y + nz[0][:, :, None]
    else:
        y = jnp.concatenate(
            [y[:, :, p * cout:(p + 1) * cout] + nz[p][:, :, None] for p in range(ppt)],
            axis=-1)

    y = jnp.where(y >= 0.0, y, slope * y)              # nn.LeakyReLU(out_channel)
    o_ref[0] = y.astype(o_ref.dtype)                   # bf16 activation carry

    if fuse_rgb:
        # ToRGB fused: modulated 1x1 conv + bias on the just-computed activation.
        # TODO(synk): RGBPAD=8 output lanes are a masked store; a lane-dense (th, W*8)
        # store layout would be denser but needs an in-kernel relayout.
        xr = (y * rgbs_ref[bb][None, None, :]).astype(jnp.bfloat16).reshape(th * wout, cout)
        rgb = jnp.dot(xr, rgbw_ref[...], preferred_element_type=jnp.float32)
        rgb_ref[0] = rgb.reshape(th, wout, RGBPAD) + rgbb_ref[0][None, None, :]


def _pick_tiles(hout, wp, wout, cin, n_out, cout, nphase, fuse_rgb):
    """Row tile / out-channel tile / vmem limit sized against a ~40 MiB per-step budget."""
    if fuse_rgb or n_out <= 512:
        tn = n_out
    else:                                   # tile large (e.g. 4*512) out-channel counts
        tn = 512
        while n_out % tn or (nphase > 1 and tn % cout):
            tn *= 2
        tn = min(tn, n_out)
    th = min(hout, TH_MAX)
    while True:
        ppt = 1 if nphase == 1 else tn // cout
        blocks = (2 * th * wp * cin * 2            # main rows (bf16, double buffered)
                  + 2 * 2 * wp * cin * 2           # halo rows
                  + 2 * 9 * cin * tn * 2           # shared base taps
                  + 2 * th * wout * tn * 2         # bf16 feature output
                  + 2 * ppt * th * wout * 4)       # noise
        if fuse_rgb:
            blocks += 2 * (th * wout * RGBPAD * 4 + cout * RGBPAD * 2)
        temps = th * wout * (8 * tn + 6 * cin) + 2 * th * wp * cin * 2
        total = blocks + temps
        if total <= VMEM_BUDGET or th <= 4:
            break
        th //= 2
    vmem_limit = int(min(56 << 20, max(32 << 20, total + (8 << 20))))
    return th, tn, vmem_limit


def modconv_call(x_pad, taps, s_in, out_scale, noise, *, hout, wout, cout, nphase,
                 slope, rgb_taps=None, rgb_scale=None, rgb_bias=None):
    """x_pad: (B, H+2, W+2, Cin) bf16; taps: (3, 3*Cin, n_out) bf16 (batch-invariant);
    s_in: (B, Cin); out_scale: (B, n_out); noise: (nphase, H, W)."""
    x_pad = x_pad.astype(jnp.bfloat16)
    b, hp, wp, cin = x_pad.shape
    k = 3
    n_out = taps.shape[-1]
    fuse_rgb = rgb_taps is not None
    th, tn, vmem_limit = _pick_tiles(hout, wp, wout, cin, n_out, cout, nphase, fuse_rgb)
    n_tiles = hout // th
    nt = n_out // tn
    ppt = 1 if nphase == 1 else tn // cout
    assert hout % th == 0 and th % (k - 1) == 0 and n_out % tn == 0
    assert (not fuse_rgb) or nt == 1

    in_specs = [
        pl.BlockSpec((1, th, wp, cin), lambda m, bb, n: (bb, m, 0, 0)),
        pl.BlockSpec((1, k - 1, wp, cin),
                     lambda m, bb, n: (bb, (m + 1) * (th // (k - 1)), 0, 0)),
        pl.BlockSpec((k, k * cin, tn), lambda m, bb, n: (0, 0, n)),
        pl.BlockSpec((b, cin), lambda m, bb, n: (0, 0)),
        pl.BlockSpec((b, tn), lambda m, bb, n: (0, n)),
        pl.BlockSpec((ppt, th, wout),
                     (lambda m, bb, n: (n, m, 0)) if nphase > 1
                     else (lambda m, bb, n: (0, m, 0))),
    ]
    operands = [x_pad, x_pad, taps, s_in, out_scale, noise]
    if fuse_rgb:
        in_specs += [pl.BlockSpec((cout, RGBPAD), lambda m, bb, n: (0, 0)),
                     pl.BlockSpec((b, cout), lambda m, bb, n: (0, 0)),
                     pl.BlockSpec((1, RGBPAD), lambda m, bb, n: (0, 0))]
        operands += [rgb_taps, rgb_scale, rgb_bias]

    feat_shape = jax.ShapeDtypeStruct((b, hout, wout, n_out), jnp.bfloat16)
    feat_spec = pl.BlockSpec((1, th, wout, tn), lambda m, bb, n: (bb, m, 0, n))
    if fuse_rgb:
        out_shape = (feat_shape,
                     jax.ShapeDtypeStruct((b, hout, wout, RGBPAD), jnp.float32))
        out_specs = (feat_spec,
                     pl.BlockSpec((1, th, wout, RGBPAD), lambda m, bb, n: (bb, m, 0, 0)))
    else:
        out_shape = feat_shape
        out_specs = feat_spec

    kernel = functools.partial(_modconv_kernel, k=k, th=th, wout=wout, cout=cout,
                               ppt=ppt, slope=slope, fuse_rgb=fuse_rgb)
    return pl.pallas_call(
        kernel,
        out_shape=out_shape,
        grid=(n_tiles, b, nt),      # row tiles leading so megacore splits rows, not batch
        in_specs=in_specs,
        out_specs=out_specs,
        compiler_params=pltpu.CompilerParams(
            dimension_semantics=("parallel", "parallel", "arbitrary"),
            vmem_limit_bytes=vmem_limit),
    )(*operands)


# ---------------------------------------------------------------------------
# Plain-JAX prep: tiny per-sample scales + batch-invariant base taps (O(params)).
# ---------------------------------------------------------------------------
def _styled_prep(style, sp):
    """Style modulation of input channels + demod factor per output channel."""
    s = jnp.dot(style, sp["mod_w"]) + sp["mod_b"]                   # (B, cin)
    w = sp["weight"]                                                # (cout, cin, 3, 3)
    scale = 1.0 / math.sqrt(w.shape[1] * 9)
    wsq = jnp.sum((scale * w) ** 2, axis=(2, 3))                    # (cout, cin)
    demod = jax.lax.rsqrt(jnp.dot(s * s, wsq.T) + 1e-8)             # (B, cout)
    return s, demod


def _same_base_taps(sp):
    w = sp["weight"]
    cout, cin = w.shape[0], w.shape[1]
    scale = 1.0 / math.sqrt(cin * 9)
    t = jnp.transpose(scale * w, (2, 3, 1, 0))                      # (3,3,cin,cout)
    return t.reshape(3, 3 * cin, cout).astype(jnp.bfloat16)


def _up_base_taps(sp, k4):
    """Fold Blur([1,3,3,1], factor=2) into the stride-2 transposed conv and split into 4
    sub-pixel phases -> batch-invariant (3, 3*cin, 4*cout) taps of a regular 3x3 conv."""
    w = sp["weight"]
    cout, cin = w.shape[0], w.shape[1]
    scale = 1.0 / math.sqrt(cin * 9)
    f = jnp.transpose((scale * w)[:, :, ::-1, ::-1], (2, 3, 1, 0))  # (3,3,cin,cout)
    w6 = jnp.zeros((6, 6, cin, cout), jnp.float32)
    for uy in range(4):
        for ux in range(4):
            w6 = w6.at[uy:uy + 3, ux:ux + 3].add(k4[uy, ux] * f)
    phases = [w6[(1 - py)::2, (1 - px)::2] for py in range(2) for px in range(2)]
    t = jnp.stack(phases, axis=3)                                   # (3,3,cin,4,cout)
    return t.reshape(3, 3 * cin, 4 * cout).astype(jnp.bfloat16)


def _rgb_base_taps(rp):
    w = rp["weight"][:, :, 0, 0]                                    # (RGBPAD, cin)
    scale = 1.0 / math.sqrt(w.shape[1])
    return (scale * w).T.astype(jnp.bfloat16)                       # (cin, RGBPAD)


def styled_conv_same(x, style, noise2d, sp, rgb_style, rp):
    """StyledConv(k=3, no upsample) with ToRGB fused in as a second output."""
    bsz, h, w, cin = x.shape
    cout = sp["out_channel"]
    s_in, demod = _styled_prep(style, sp)
    taps = _same_base_taps(sp)
    xp = jnp.pad(x, ((0, 0), (1, 1), (1, 1), (0, 0)))
    noise = (sp["noise_weight"] * noise2d)[None]                    # (1, H, W)
    s_rgb = jnp.dot(rgb_style, rp["mod_w"]) + rp["mod_b"]           # (B, cout)
    return modconv_call(xp, taps, s_in, demod, noise,
                        hout=h, wout=w, cout=cout, nphase=1, slope=float(cout),
                        rgb_taps=_rgb_base_taps(rp), rgb_scale=s_rgb, rgb_bias=rp["bias"])


def styled_conv_up(x, style, noise2h, sp, blur_k4):
    """StyledConv(k=3, upsample=True): blur folded into 4 sub-pixel phase taps."""
    bsz, h, w, cin = x.shape
    cout = sp["out_channel"]
    s_in, demod = _styled_prep(style, sp)
    out_scale = jnp.tile(demod, (1, 4))                             # phase-major (B, 4*cout)
    taps = _up_base_taps(sp, blur_k4)
    xp = jnp.pad(x, ((0, 0), (1, 1), (1, 1), (0, 0)))
    ns = sp["noise_weight"] * noise2h                               # (2H, 2W)
    nph = ns.reshape(h, 2, w, 2).transpose(1, 3, 0, 2).reshape(4, h, w)
    out4 = modconv_call(xp, taps, s_in, out_scale, nph,
                        hout=h, wout=w, cout=cout, nphase=4, slope=float(cout))
    # TODO(synk): phase de-interleave is a pure layout pass left to XLA (bf16, one read+write);
    # absorbing it into the next conv / output index_map is a further bandwidth win.
    out = out4.reshape(bsz, h, w, 2, 2, cout).transpose(0, 1, 3, 2, 4, 5)
    return out.reshape(bsz, 2 * h, 2 * w, cout)


def generator_forward(params, style_inputs, noises, inject_index):
    bsz = style_inputs[0].shape[0]
    mapped = mapping_network(jnp.concatenate(style_inputs, axis=0), params["mapping"])
    style0, style1 = mapped[:bsz], mapped[bsz:]
    latent = [style0 if i < inject_index else style1
              for i in range(params["n_latent"])]

    c0 = params["channels"][0]
    x = jnp.broadcast_to(params["input"][None].astype(jnp.bfloat16), (bsz, 4, 4, c0))
    out, skip = styled_conv_same(x, latent[0], noises[0], params["conv1"],
                                 latent[1], params["to_rgb1"])

    idx = 1
    for s in range(params["num_stages"]):
        out = styled_conv_up(out, latent[idx], noises[2 * s + 1],
                             params["convs"][2 * s], params["blur_k4"])
        out, rgb = styled_conv_same(out, latent[idx + 1], noises[2 * s + 2],
                                    params["convs"][2 * s + 1],
                                    latent[idx + 2], params["to_rgbs"][s])
        # TODO(synk): nn.Upsample(2) nearest skip upsample + add kept in plain JAX
        # (8-channel RGB tensor only; the full feature map is never re-read).
        skip = jnp.repeat(jnp.repeat(skip, 2, axis=1), 2, axis=2) + rgb
        idx += 2
    img = skip[:, :, :, :3]                         # drop RGB padding channels
    return jnp.transpose(img, (0, 3, 1, 2))         # NCHW


# ---------------------------------------------------------------------------
# Deterministic synthetic parameters (structure per the module's __init__).
# ---------------------------------------------------------------------------
def init_params(key, style_dim, channels):
    num_stages = len(channels) - 1
    kit = iter(jax.random.split(key, 1024))

    def nrm(shape, std=1.0):
        return std * jax.random.normal(next(kit), shape, dtype=jnp.float32)

    def make_styled(in_c, out_c):
        return dict(weight=nrm((out_c, in_c, 3, 3)),
                    mod_w=nrm((style_dim, in_c), std=1.0 / math.sqrt(style_dim)),
                    mod_b=nrm((in_c,), std=0.01),
                    out_channel=out_c,
                    noise_weight=jnp.zeros((), jnp.float32))   # NoiseInjection.weight = 0

    def make_torgb(in_c):
        w = jnp.concatenate([nrm((3, in_c, 1, 1)),
                             jnp.zeros((RGBPAD - 3, in_c, 1, 1), jnp.float32)], axis=0)
        return dict(weight=w,
                    mod_w=nrm((style_dim, in_c), std=1.0 / math.sqrt(style_dim)),
                    mod_b=nrm((in_c,), std=0.01),
                    bias=jnp.zeros((1, RGBPAD), jnp.float32))

    p = dict(num_stages=num_stages, channels=channels, n_latent=2 * num_stages + 2)
    # Small-scale init: LeakyReLU(negative_slope=out_channel) amplifies activations by
    # design; small init keeps everything finite.
    p["mapping"] = dict(w=nrm((8, style_dim, style_dim), std=1e-4),
                        b=nrm((8, style_dim), std=1e-3))
    p["input"] = nrm((4, 4, channels[0]), std=1e-6)        # const input, NHWC
    p["conv1"] = make_styled(channels[0], channels[0])
    p["to_rgb1"] = make_torgb(channels[0])
    p["convs"], p["to_rgbs"] = [], []
    for j in range(num_stages):
        cin, cout = channels[j], channels[j + 1]
        p["convs"].append(make_styled(cin, cout))          # upsample conv
        p["convs"].append(make_styled(cout, cout))         # regular conv
        p["to_rgbs"].append(make_torgb(cout))
    k1 = jnp.array([1.0, 3.0, 3.0, 1.0], jnp.float32)      # Blur([1,3,3,1], factor=2)
    k2 = jnp.outer(k1, k1)
    p["blur_k4"] = k2 / jnp.sum(k2) * 4.0
    return p


def make_noises(key, num_stages):
    sizes = [4] + [4 * 2 ** (j + 1) for j in range(num_stages) for _ in range(2)]
    keys = jax.random.split(key, len(sizes))
    return [jax.random.normal(k, (s, s), jnp.float32) for k, s in zip(keys, sizes)]


if __name__ == "__main__":
    # Reduced demo config (full module: style_dim=512, channels=[512]*5+[256,128,64]).
    STYLE_DIM = 128
    CHANNELS = [32, 32, 16, 16, 8]            # 4 stages -> 64x64 output
    root = jax.random.PRNGKey(0)
    k_par, k_noise, k_s0, k_s1 = jax.random.split(root, 4)
    params = init_params(k_par, STYLE_DIM, CHANNELS)
    noises = make_noises(k_noise, len(CHANNELS) - 1)

    B = 2
    style0 = jax.random.normal(k_s0, (B, STYLE_DIM), jnp.float32)
    style1 = jax.random.normal(k_s1, (B, STYLE_DIM), jnp.float32)

    random.seed(0)
    inject_index = random.randint(1, params["n_latent"] - 1)   # as in the module forward

    image = generator_forward(params, [style0, style1], noises, inject_index)
    image = jax.block_until_ready(image)
    res = 4 * 2 ** (len(CHANNELS) - 1)
    assert image.shape == (B, 3, res, res) and image.dtype == jnp.float32
    assert bool(jnp.all(jnp.isfinite(image)))
    print("KERNEL_OK")
</pallas_src>

<mosaic_0001>
module attributes {stable_mosaic.version = 11 : i64} {
  func.func @_mapping_kernel(%arg0: i32, %arg1: memref<4x128xf32, #tpu.memory_space<vmem>>, %arg2: memref<8x128x128xbf16, #tpu.memory_space<vmem>>, %arg3: memref<8x128xf32, #tpu.memory_space<vmem>>, %arg4: memref<4x128xf32, #tpu.memory_space<vmem>>) attributes {dimension_semantics = [#tpu.dimension_semantics<arbitrary>], iteration_bounds = array<i64: 1>, scalar_prefetch = 0 : i64, scratch_operands = 0 : i64, tpu.core_type = #tpu.core_type<tc>, window_params = [{pipeline_mode = #tpu.pipeline_mode<synchronous>, transform_indices = @transform_0, window_bounds = array<i64: 4, 128>}, {pipeline_mode = #tpu.pipeline_mode<synchronous>, transform_indices = @transform_1, window_bounds = array<i64: 8, 128, 128>}, {pipeline_mode = #tpu.pipeline_mode<synchronous>, transform_indices = @transform_2, window_bounds = array<i64: 8, 128>}, {pipeline_mode = #tpu.pipeline_mode<synchronous>, transform_indices = @transform_3, window_bounds = array<i64: 4, 128>}]} {
    %c0 = arith.constant 0 : index
    %c0_0 = arith.constant 0 : index
    %0 = vector.load %arg1[%c0, %c0_0] : memref<4x128xf32, #tpu.memory_space<vmem>>, vector<4x128xf32>
    %1 = arith.mulf %0, %0 : vector<4x128xf32>
    %cst = arith.constant dense<0.000000e+00> : vector<4xf32>
    %2 = vector.multi_reduction <add>, %1, %cst [1] : vector<4x128xf32> to vector<4xf32>
    %3 = vector.shape_cast %2 : vector<4xf32> to vector<4x1xf32>
    %cst_1 = arith.constant 1.280000e+02 : f32
    %4 = vector.broadcast %cst_1 : f32 to vector<4x1xf32>
    %5 = arith.divf %3, %4 : vector<4x1xf32>
    %cst_2 = arith.constant 9.99999993E-9 : f32
    %6 = vector.broadcast %cst_2 : f32 to vector<4x1xf32>
    %7 = arith.addf %5, %6 : vector<4x1xf32>
    %8 = math.rsqrt %7 : vector<4x1xf32>
    %9 = vector.broadcast %8 : vector<4x1xf32> to vector<4x128xf32>
    %10 = arith.mulf %0, %9 : vector<4x128xf32>
    %11 = arith.truncf %10 : vector<4x128xf32> to vector<4x128xbf16>
    %c0_3 = arith.constant 0 : index
    %c0_4 = arith.constant 0 : index
    %c0_5 = arith.constant 0 : index
    %12 = vector.load %arg2[%c0_3, %c0_4, %c0_5] : memref<8x128x128xbf16, #tpu.memory_space<vmem>>, vector<1x128x128xbf16>
    %13 = vector.shape_cast %12 : vector<1x128x128xbf16> to vector<128x128xbf16>
    %cst_6 = arith.constant dense<0.000000e+00> : vector<4x128xf32>
    %14 = tpu.matmul %11, %13, %cst_6 {dimension_numbers = #tpu.dot_dimension_numbers<[1], [0], [0], [1], [0, 0, 1, 1], [], []>} : vector<4x128xbf16>, vector<128x128xbf16>, vector<4x128xf32> -> vector<4x128xf32>
    %c0_7 = arith.constant 0 : index
    %c0_8 = arith.constant 0 : index
    %15 = vector.load %arg3[%c0_7, %c0_8] : memref<8x128xf32, #tpu.memory_space<vmem>>, vector<1x128xf32>
    %16 = vector.shape_cast %15 : vector<1x128xf32> to vector<128xf32>
    %17 = vector.shape_cast %16 : vector<128xf32> to vector<1x128xf32>
    %18 = vector.broadcast %17 : vector<1x128xf32> to vector<4x128xf32>
    %19 = arith.addf %14, %18 : vector<4x128xf32>
    %cst_9 = arith.constant 0.000000e+00 : f32
    %20 = vector.broadcast %cst_9 : f32 to vector<4x128xf32>
    %21 = arith.cmpf oge, %19, %20 : vector<4x128xf32>
    %cst_10 = arith.constant 5.120000e+02 : f32
    %22 = vector.broadcast %cst_10 : f32 to vector<4x128xf32>
    %23 = arith.mulf %22, %19 : vector<4x128xf32>
    %24 = arith.select %21, %19, %23 : vector<4x128xi1>, vector<4x128xf32>
    %25 = arith.truncf %24 : vector<4x128xf32> to vector<4x128xbf16>
    %c1 = arith.constant 1 : index
    %c0_11 = arith.constant 0 : index
    %c0_12 = arith.constant 0 : index
    %26 = vector.load %arg2[%c1, %c0_11, %c0_12] : memref<8x128x128xbf16, #tpu.memory_space<vmem>>, vector<1x128x128xbf16>
    %27 = vector.shape_cast %26 : vector<1x128x128xbf16> to vector<128x128xbf16>
    %cst_13 = arith.constant dense<0.000000e+00> : vector<4x128xf32>
    %28 = tpu.matmul %25, %27, %cst_13 {dimension_numbers = #tpu.dot_dimension_numbers<[1], [0], [0], [1], [0, 0, 1, 1], [], []>} : vector<4x128xbf16>, vector<128x128xbf16>, vector<4x128xf32> -> vector<4x128xf32>
    %c1_14 = arith.constant 1 : index
    %c0_15 = arith.constant 0 : index
    %29 = vector.load %arg3[%c1_14, %c0_15] : memref<8x128xf32, #tpu.memory_space<vmem>>, vector<1x128xf32>
    %30 = vector.shape_cast %29 : vector<1x128xf32> to vector<128xf32>
    %31 = vector.shape_cast %30 : vector<128xf32> to vector<1x128xf32>
    %32 = vector.broadcast %31 : vector<1x128xf32> to vector<4x128xf32>
    %33 = arith.addf %28, %32 : vector<4x128xf32>
    %cst_16 = arith.constant 0.000000e+00 : f32
    %34 = vector.broadcast %cst_16 : f32 to vector<4x128xf32>
    %35 = arith.cmpf oge, %33, %34 : vector<4x128xf32>
    %cst_17 = arith.constant 5.120000e+02 : f32
    %36 = vector.broadcast %cst_17 : f32 to vector<4x128xf32>
    %37 = arith.mulf %36, %33 : vector<4x128xf32>
    %38 = arith.select %35, %33, %37 : vector<4x128xi1>, vector<4x128xf32>
    %39 = arith.truncf %38 : vector<4x128xf32> to vector<4x128xbf16>
    %c2 = arith.constant 2 : index
    %c0_18 = arith.constant 0 : index
    %c0_19 = arith.constant 0 : index
    %40 = vector.load %arg2[%c2, %c0_18, %c0_19] : memref<8x128x128xbf16, #tpu.memory_space<vmem>>, vector<1x128x128xbf16>
    %41 = vector.shape_cast %40 : vector<1x128x128xbf16> to vector<128x128xbf16>
    %cst_20 = arith.constant dense<0.000000e+00> : vector<4x128xf32>
    %42 = tpu.matmul %39, %41, %cst_20 {dimension_numbers = #tpu.dot_dimension_numbers<[1], [0], [0], [1], [0, 0, 1, 1], [], []>} : vector<4x128xbf16>, vector<128x128xbf16>, vector<4x128xf32> -> vector<4x128xf32>
    %c2_21 = arith.constant 2 : index
    %c0_22 = arith.constant 0 : index
    %43 = vector.load %arg3[%c2_21, %c0_22] : memref<8x128xf32, #tpu.memory_space<vmem>>, vector<1x128xf32>
    %44 = vector.shape_cast %43 : vector<1x128xf32> to vector<128xf32>
    %45 = vector.shape_cast %44 : vector<128xf32> to vector<1x128xf32>
    %46 = vector.broadcast %45 : vector<1x128xf32> to vector<4x128xf32>
    %47 = arith.addf %42, %46 : vector<4x128xf32>
    %cst_23 = arith.constant 0.000000e+00 : f32
    %48 = vector.broadcast %cst_23 : f32 to vector<4x128xf32>
    %49 = arith.cmpf oge, %47, %48 : vector<4x128xf32>
    %cst_24 = arith.constant 5.120000e+02 : f32
    %50 = vector.broadcast %cst_24 : f32 to vector<4x128xf32>
    %51 = arith.mulf %50, %47 : vector<4x128xf32>
    %52 = arith.select %49, %47, %51 : vector<4x128xi1>, vector<4x128xf32>
    %53 = arith.truncf %52 : vector<4x128xf32> to vector<4x128xbf16>
    %c3 = arith.constant 3 : index
    %c0_25 = arith.constant 0 : index
    %c0_26 = arith.constant 0 : index
    %54 = vector.load %arg2[%c3, %c0_25, %c0_26] : memref<8x128x128xbf16, #tpu.memory_space<vmem>>, vector<1x128x128xbf16>
    %55 = vector.shape_cast %54 : vector<1x128x128xbf16> to vector<128x128xbf16>
    %cst_27 = arith.constant dense<0.000000e+00> : vector<4x128xf32>
    %56 = tpu.matmul %53, %55, %cst_27 {dimension_numbers = #tpu.dot_dimension_numbers<[1], [0], [0], [1], [0, 0, 1, 1], [], []>} : vector<4x128xbf16>, vector<128x128xbf16>, vector<4x128xf32> -> vector<4x128xf32>
    %c3_28 = arith.constant 3 : index
    %c0_29 = arith.constant 0 : index
    %57 = vector.load %arg3[%c3_28, %c0_29] : memref<8x128xf32, #tpu.memory_space<vmem>>, vector<1x128xf32>
    %58 = vector.shape_cast %57 : vector<1x128xf32> to vector<128xf32>
    %59 = vector.shape_cast %58 : vector<128xf32> to vector<1x128xf32>
    %60 = vector.broadcast %59 : vector<1x128xf32> to vector<4x128xf32>
    %61 = arith.addf %56, %60 : vector<4x128xf32>
    %cst_30 = arith.constant 0.000000e+00 : f32
    %62 = vector.broadcast %cst_30 : f32 to vector<4x128xf32>
    %63 = arith.cmpf oge, %61, %62 : vector<4x128xf32>
    %cst_31 = arith.constant 5.120000e+02 : f32
    %64 = vector.broadcast %cst_31 : f32 to vector<4x128xf32>
    %65 = arith.mulf %64, %61 : vector<4x128xf32>
    %66 = arith.select %63, %61, %65 : vector<4x128xi1>, vector<4x128xf32>
    %67 = arith.truncf %66 : vector<4x128xf32> to vector<4x128xbf16>
    %c4 = arith.constant 4 : index
    %c0_32 = arith.constant 0 : index
    %c0_33 = arith.constant 0 : index
    %68 = vector.load %arg2[%c4, %c0_32, %c0_33] : memref<8x128x128xbf16, #tpu.memory_space<vmem>>, vector<1x128x128xbf16>
    %69 = vector.shape_cast %68 : vector<1x128x128xbf16> to vector<128x128xbf16>
    %cst_34 = arith.constant dense<0.000000e+00> : vector<4x128xf32>
    %70 = tpu.matmul %67, %69, %cst_34 {dimension_numbers = #tpu.dot_dimension_numbers<[1], [0], [0], [1], [0, 0, 1, 1], [], []>} : vector<4x128xbf16>, vector<128x128xbf16>, vector<4x128xf32> -> vector<4x128xf32>
    %c4_35 = arith.constant 4 : index
    %c0_36 = arith.constant 0 : index
    %71 = vector.load %arg3[%c4_35, %c0_36] : memref<8x128xf32, #tpu.memory_space<vmem>>, vector<1x128xf32>
    %72 = vector.shape_cast %71 : vector<1x128xf32> to vector<128xf32>
    %73 = vector.shape_cast %72 : vector<128xf32> to vector<1x128xf32>
    %74 = vector.broadcast %73 : vector<1x128xf32> to vector<4x128xf32>
    %75 = arith.addf %70, %74 : vector<4x128xf32>
    %cst_37 = arith.constant 0.000000e+00 : f32
    %76 = vector.broadcast %cst_37 : f32 to vector<4x128xf32>
    %77 = arith.cmpf oge, %75, %76 : vector<4x128xf32>
    %cst_38 = arith.constant 5.120000e+02 : f32
    %78 = vector.broadcast %cst_38 : f32 to vector<4x128xf32>
    %79 = arith.mulf %78, %75 : vector<4x128xf32>
    %80 = arith.select %77, %75, %79 : vector<4x128xi1>, vector<4x128xf32>
    %81 = arith.truncf %80 : vector<4x128xf32> to vector<4x128xbf16>
    %c5 = arith.constant 5 : index
    %c0_39 = arith.constant 0 : index
    %c0_40 = arith.constant 0 : index
    %82 = vector.load %arg2[%c5, %c0_39, %c0_40] : memref<8x128x128xbf16, #tpu.memory_space<vmem>>, vector<1x128x128xbf16>
    %83 = vector.shape_cast %82 : vector<1x128x128xbf16> to vector<128x128xbf16>
    %cst_41 = arith.constant dense<0.000000e+00> : vector<4x128xf32>
    %84 = tpu.matmul %81, %83, %cst_41 {dimension_numbers = #tpu.dot_dimension_numbers<[1], [0], [0], [1], [0, 0, 1, 1], [], []>} : vector<4x128xbf16>, vector<128x128xbf16>, vector<4x128xf32> -> vector<4x128xf32>
    %c5_42 = arith.constant 5 : index
    %c0_43 = arith.constant 0 : index
    %85 = vector.load %arg3[%c5_42, %c0_43] : memref<8x128xf32, #tpu.memory_space<vmem>>, vector<1x128xf32>
    %86 = vector.shape_cast %85 : vector<1x128xf32> to vector<128xf32>
    %87 = vector.shape_cast %86 : vector<128xf32> to vector<1x128xf32>
    %88 = vector.broadcast %87 : vector<1x128xf32> to vector<4x128xf32>
    %89 = arith.addf %84, %88 : vector<4x128xf32>
    %cst_44 = arith.constant 0.000000e+00 : f32
    %90 = vector.broadcast %cst_44 : f32 to vector<4x128xf32>
    %91 = arith.cmpf oge, %89, %90 : vector<4x128xf32>
    %cst_45 = arith.constant 5.120000e+02 : f32
    %92 = vector.broadcast %cst_45 : f32 to vector<4x128xf32>
    %93 = arith.mulf %92, %89 : vector<4x128xf32>
    %94 = arith.select %91, %89, %93 : vector<4x128xi1>, vector<4x128xf32>
    %95 = arith.truncf %94 : vector<4x128xf32> to vector<4x128xbf16>
    %c6 = arith.constant 6 : index
    %c0_46 = arith.constant 0 : index
    %c0_47 = arith.constant 0 : index
    %96 = vector.load %arg2[%c6, %c0_46, %c0_47] : memref<8x128x128xbf16, #tpu.memory_space<vmem>>, vector<1x128x128xbf16>
    %97 = vector.shape_cast %96 : vector<1x128x128xbf16> to vector<128x128xbf16>
    %cst_48 = arith.constant dense<0.000000e+00> : vector<4x128xf32>
    %98 = tpu.matmul %95, %97, %cst_48 {dimension_numbers = #tpu.dot_dimension_numbers<[1], [0], [0], [1], [0, 0, 1, 1], [], []>} : vector<4x128xbf16>, vector<128x128xbf16>, vector<4x128xf32> -> vector<4x128xf32>
    %c6_49 = arith.constant 6 : index
    %c0_50 = arith.constant 0 : index
    %99 = vector.load %arg3[%c6_49, %c0_50] : memref<8x128xf32, #tpu.memory_space<vmem>>, vector<1x128xf32>
    %100 = vector.shape_cast %99 : vector<1x128xf32> to vector<128xf32>
    %101 = vector.shape_cast %100 : vector<128xf32> to vector<1x128xf32>
    %102 = vector.broadcast %101 : vector<1x128xf32> to vector<4x128xf32>
    %103 = arith.addf %98, %102 : vector<4x128xf32>
    %cst_51 = arith.constant 0.000000e+00 : f32
    %104 = vector.broadcast %cst_51 : f32 to vector<4x128xf32>
    %105 = arith.cmpf oge, %103, %104 : vector<4x128xf32>
    %cst_52 = arith.constant 5.120000e+02 : f32
    %106 = vector.broadcast %cst_52 : f32 to vector<4x128xf32>
    %107 = arith.mulf %106, %103 : vector<4x128xf32>
    %108 = arith.select %105, %103, %107 : vector<4x128xi1>, vector<4x128xf32>
    %109 = arith.truncf %108 : vector<4x128xf32> to vector<4x128xbf16>
    %c7 = arith.constant 7 : index
    %c0_53 = arith.constant 0 : index
    %c0_54 = arith.constant 0 : index
    %110 = vector.load %arg2[%c7, %c0_53, %c0_54] : memref<8x128x128xbf16, #tpu.memory_space<vmem>>, vector<1x128x128xbf16>
    %111 = vector.shape_cast %110 : vector<1x128x128xbf16> to vector<128x128xbf16>
    %cst_55 = arith.constant dense<0.000000e+00> : vector<4x128xf32>
    %112 = tpu.matmul %109, %111, %cst_55 {dimension_numbers = #tpu.dot_dimension_numbers<[1], [0], [0], [1], [0, 0, 1, 1], [], []>} : vector<4x128xbf16>, vector<128x128xbf16>, vector<4x128xf32> -> vector<4x128xf32>
    %c7_56 = arith.constant 7 : index
    %c0_57 = arith.constant 0 : index
    %113 = vector.load %arg3[%c7_56, %c0_57] : memref<8x128xf32, #tpu.memory_space<vmem>>, vector<1x128xf32>
    %114 = vector.shape_cast %113 : vector<1x128xf32> to vector<128xf32>
    %115 = vector.shape_cast %114 : vector<128xf32> to vector<1x128xf32>
    %116 = vector.broadcast %115 : vector<1x128xf32> to vector<4x128xf32>
    %117 = arith.addf %112, %116 : vector<4x128xf32>
    %cst_58 = arith.constant 0.000000e+00 : f32
    %118 = vector.broadcast %cst_58 : f32 to vector<4x128xf32>
    %119 = arith.cmpf oge, %117, %118 : vector<4x128xf32>
    %cst_59 = arith.constant 5.120000e+02 : f32
    %120 = vector.broadcast %cst_59 : f32 to vector<4x128xf32>
    %121 = arith.mulf %120, %117 : vector<4x128xf32>
    %122 = arith.select %119, %117, %121 : vector<4x128xi1>, vector<4x128xf32>
    %c0_60 = arith.constant 0 : index
    %c0_61 = arith.constant 0 : index
    %123 = vector.load %arg4[%c0_60, %c0_61] : memref<4x128xf32, #tpu.memory_space<vmem>>, vector<4x128xf32>
    tpu.vector_store %arg4[%c0_60, %c0_61], %122 {strides = array<i32>} : memref<4x128xf32, #tpu.memory_space<vmem>>, vector<4x128xf32>,
    return
  }
  func.func @transform_0(%arg0: i32) -> (i32, i32) {
    %c0_i32 = arith.constant 0 : i32
    %c0_i32_0 = arith.constant 0 : i32
    %c0_i32_1 = arith.constant 0 : i32
    return %c0_i32, %c0_i32_0 : i32, i32
  }
  func.func @transform_1(%arg0: i32) -> (i32, i32, i32) {
    %c0_i32 = arith.constant 0 : i32
    %c0_i32_0 = arith.constant 0 : i32
    %c0_i32_1 = arith.constant 0 : i32
    %c0_i32_2 = arith.constant 0 : i32
    return %c0_i32, %c0_i32_0, %c0_i32_1 : i32, i32, i32
  }
  func.func @transform_2(%arg0: i32) -> (i32, i32) {
    %c0_i32 = arith.constant 0 : i32
    %c0_i32_0 = arith.constant 0 : i32
    %c0_i32_1 = arith.constant 0 : i32
    return %c0_i32, %c0_i32_0 : i32, i32
  }
  func.func @transform_3(%arg0: i32) -> (i32, i32) {
    %c0_i32 = arith.constant 0 : i32
    %c0_i32_0 = arith.constant 0 : i32
    %c0_i32_1 = arith.constant 0 : i32
    return %c0_i32, %c0_i32_0 : i32, i32
  }
}

</mosaic_0001>

<bundles_post_ra>
// kernel: tpu_custom_call.1
= control target key start
LH: loop header
LB: loop body
LE: loop exit
PB: predicated region body
PF: predicated region fallthrough
CT: control target
= control target key end

     0   :  { %8 = vsyncpa [#allocation3], 0  ;;  %s1576_s0 = inlined_call_operand.hbm [shape: f32[4,128], index: 0, kind: input, shape index: {}]   ;;  %s1577_s1 = inlined_call_operand.hbm [shape: bf16[8,128,128], index: 1, kind: input, shape index: {}]   ;;  %s1578_s2 = inlined_call_operand.hbm [shape: f32[8,128], index: 2, kind: input, shape index: {}]   ;;  %s1579_s3 = inlined_call_operand.hbm [shape: f32[4,128], index: 3, kind: output, shape index: {}]  }
   0x1   :  { %9 = vsyncpa [#allocation6], 0 }
   0x2   :  { %10 = vsyncpa [#allocation4], 0  ;;  %s1456_s12 = smov [#allocation5]  }
   0x3   :  { %s26_s13 = sshll.u32 %s1456_s12, 4  ;;  %s27_s13 = int_to_ptr.vmem [resolvable:$true] %s26_s13 }
   0x4   :  { %s1378_s14 = scalar_lea.vmem %s27_s13, 8192  ;;  %p1383_p1 = scmp.lt.s32.totalorder %s27_s13, %s27_s13 }
   0x5   :  { %p1379_p0 = scmp.ne.s32.totalorder %s27_s13, %s1378_s14  ;;  %p1384_p2 = scmp.lt.s32.totalorder %s1378_s14, %s1378_s14 }
   0x7   :  { %p1385_p3 = por %p1384_p2, %p1383_p1 }
   0x9   :  { %p1386_p4 = pnand %p1385_p3, %p1379_p0 }
   0xb   :  { %1389 = shalt.err (!%p1386_p4)
}
   0xc   :  { %s1457_s15 = smov 64   ;;  %s1458_s16 = smov 4  }
   0xd   :  { %32 = dma.hbm_to_vmem [thread:$0]  %s1577_s1, 8192, %s27_s13, [#allocation6], %s1457_s15, %s1457_s15, %s1458_s16  }
   0xe   :  { %s1459_s19 = smov [#allocation2]   ;;  %s1460_s21 = smov [#allocation7]  }
   0xf   :  { %s17_s20 = sshll.u32 %s1459_s19, 4  ;;  %s39_s22 = sshll.u32 %s1460_s21, 4  ;;  %s18_s20 = int_to_ptr.vmem [resolvable:$true] %s17_s20  ;;  %s40_s22 = int_to_ptr.vmem [resolvable:$true] %s39_s22 }
  0x10   :  { %s1398_s23 = scalar_lea.vmem %s18_s20, 64  ;;  %p1403_p6 = scmp.lt.s32.totalorder %s18_s20, %s18_s20 }
  0x11   :  { %p1399_p5 = scmp.ne.s32.totalorder %s18_s20, %s1398_s23  ;;  %p1404_p7 = scmp.lt.s32.totalorder %s1398_s23, %s1398_s23 }
  0x13   :  { %p1405_p8 = por %p1404_p7, %p1403_p6 }
  0x15   :  { %p1406_p9 = pnand %p1405_p8, %p1399_p5 }
  0x17   :  { %1409 = shalt.err (!%p1406_p9)
}
  0x18   :  { %20 = dma.hbm_to_vmem [thread:$0]  %s1576_s0, 64, %s18_s20, [#allocation3]  }
  0x19   :  { %s1418_s26 = scalar_lea.vmem %s40_s22, 128  ;;  %p1423_p11 = scmp.lt.s32.totalorder %s40_s22, %s40_s22 }
  0x1a   :  { %p1419_p10 = scmp.ne.s32.totalorder %s40_s22, %s1418_s26  ;;  %p1424_p12 = scmp.lt.s32.totalorder %s1418_s26, %s1418_s26 }
  0x1c   :  { %p1425_p13 = por %p1424_p12, %p1423_p11 }
  0x1e   :  { %p1426_p0 = pnand %p1425_p13, %p1419_p10 }
  0x20   :  { %1429 = shalt.err (!%p1426_p0)
}
  0x21   :  { %42 = dma.hbm_to_vmem [thread:$0]  %s1578_s2, 128, %s40_s22, [#allocation6]  }
  0x22   :  { %1450 = dma.done.wait [#allocation3], 64  }
  0x23   :  { %1451 = vsyncadd [#allocation3], 4294967232 }
  0x24   :  { %1452 = dma.done.wait [#allocation6], 8320  }
  0x25   :  { %1453 = vsyncadd [#allocation6], 4294958976  ;;  %v1461_v0 = vmov 0.0   ;;  %vm55_vm0 = vcmask 1043456   ;;  %v53_v1 = vld [vmem:[#allocation2] sm:$0xf] }
  0x26   :  { %1136 = vmatprep.subr.bf16.mxu0 %v1461_v0  ;;  %1156 = vmatprep.subr.bf16.mxu1 %v1461_v0  ;;  %v54_v2 = vmul.f32 %v53_v1, %v53_v1  ;;  %v1304_v3 = vld [vmem:[#allocation5 + $0x38] sm:$0xff]   ;;  %v1305_v5 = vld [vmem:[#allocation5 + $0x30] sm:$0xff]   ;;  %v1306_v6 = vld [vmem:[#allocation5 + $0x28] sm:$0xff]   ;;  %vm1462_vm1 = vmmov 0   ;;  %s1463_s0 = smov [#allocation8]  }
  0x27   :  { %1137 = vmatpush3.bf16.msra.mxu0 %v1304_v3  ;;  %v1307_v7 = vld [vmem:[#allocation5 + $0x20] sm:$0xff]   ;;  %v1308_v8 = vld [vmem:[#allocation5 + $0x18] sm:$0xff]   ;;  %v1309_v9 = vld [vmem:[#allocation5 + $0x10] sm:$0xff]   ;;  %1152 = vmatprep.mubr.msk.bf16.mxu0 %vm1462_vm1, %v1461_v0  ;;  %s982_s2 = sshll.u32 %s1463_s0, 4  ;;  %s983_s2 = int_to_ptr.vmem [resolvable:$true] %s982_s2 }
  0x28   :  { %v56_v4 = vsel %vm55_vm0, %v54_v2, 0.0  ;;  %1138 = vmatprep.subr.bf16.mxu0 %v1461_v0  ;;  %1172 = vmatprep.mubr.msk.bf16.mxu1 %vm1462_vm1, %v1461_v0  ;;  %v1310_v10 = vld [vmem:[#allocation5 + $0x8] sm:$0xff]   ;;  %v1311_v11 = vld [vmem:[#allocation5] sm:$0xff]   ;;  %v1312_v12 = vld [vmem:[#allocation5 + $0x78] sm:$0xff]   ;;  %s1430_s28 = scalar_lea.vmem %s983_s2, 64  ;;  %p1435_p2 = scmp.lt.s32.totalorder %s983_s2, %s983_s2 }
  0x29   :  { %57 = vadd.xlane.f32.xlu0 %v56_v4  ;;  %1157 = vmatpush3.bf16.msra.mxu1 %v1312_v12  ;;  %v1313_v13 = vld [vmem:[#allocation5 + $0x70] sm:$0xff]   ;;  %v1314_v14 = vld [vmem:[#allocation5 + $0x68] sm:$0xff]   ;;  %v1315_v15 = vld [vmem:[#allocation5 + $0x60] sm:$0xff]   ;;  %p1431_p1 = scmp.ne.s32.totalorder %s983_s2, %s1430_s28  ;;  %p1436_p3 = scmp.lt.s32.totalorder %s1430_s28, %s1430_s28 }
  0x2a   :  { %1158 = vmatprep.subr.bf16.mxu1 %v1461_v0  ;;  %v1316_v16 = vld [vmem:[#allocation5 + $0x58] sm:$0xff]   ;;  %v1317_v17 = vld [vmem:[#allocation5 + $0x50] sm:$0xff]   ;;  %v1318_v24 = vld [vmem:[#allocation5 + $0x48] sm:$0xff]  }
  0x2b   :  { %1139 = vmatpush3.bf16.msra.mxu0 %v1305_v5  ;;  %v1319_v25 = vld [vmem:[#allocation5 + $0x40] sm:$0xff]   ;;  %v1320_v26 = vld [vmem:[#allocation5 + $0xb8] sm:$0xff]   ;;  %v1321_v27 = vld [vmem:[#allocation5 + $0xb0] sm:$0xff]   ;;  %p1437_p4 = por %p1436_p3, %p1435_p2 }
  0x2c   :  { %1140 = vmatprep.subr.bf16.mxu0 %v1461_v0  ;;  %v1322_v28 = vld [vmem:[#allocation5 + $0xa8] sm:$0xff]   ;;  %v1323_v29 = vld [vmem:[#allocation5 + $0xa0] sm:$0xff]   ;;  %v1324_v30 = vld [vmem:[#allocation5 + $0x98] sm:$0xff]  }
  0x2d   :  { %1159 = vmatpush3.bf16.msra.mxu1 %v1313_v13  ;;  %v1325_v31 = vld [vmem:[#allocation5 + $0x90] sm:$0xff]   ;;  %v992_v32 = vld [vmem:[#allocation7] ss:$0 sm:$0xff]  ;;  %v1326_v41 = vld [vmem:[#allocation5 + $0x88] sm:$0xff]   ;;  %p1438_p5 = pnand %p1437_p4, %p1431_p1 }
  0x2e   :  { %1160 = vmatprep.subr.bf16.mxu1 %v1461_v0  ;;  %v1327_v42 = vld [vmem:[#allocation5 + $0x80] sm:$0xff]   ;;  %v1328_v43 = vld [vmem:[#allocation5 + $0xf8] sm:$0xff]   ;;  %v1329_v44 = vld [vmem:[#allocation5 + $0xf0] sm:$0xff]  }
  0x2f   :  { %1141 = vmatpush3.bf16.msra.mxu0 %v1306_v6  ;;  %v1330_v45 = vld [vmem:[#allocation5 + $0xe8] sm:$0xff]   ;;  %v1331_v46 = vld [vmem:[#allocation5 + $0xe0] sm:$0xff]   ;;  %v1332_v47 = vld [vmem:[#allocation5 + $0xd8] sm:$0xff]  }
  0x30   :  { %1142 = vmatprep.subr.bf16.mxu0 %v1461_v0  ;;  %v1333_v48 = vld [vmem:[#allocation5 + $0xd0] sm:$0xff]   ;;  %v1001_v49 = vld [vmem:[#allocation7 + $0x1] ss:$0 sm:$0xff]  ;;  %v1334_v58 = vld [vmem:[#allocation5 + $0xc8] sm:$0xff]  }
  0x31   :  { %1161 = vmatpush3.bf16.msra.mxu1 %v1314_v14  ;;  %v1335_v59 = vld [vmem:[#allocation5 + $0xc0] sm:$0xff]   ;;  %v1336_v60 = vld [vmem:[#allocation5 + $0x138] sm:$0xff]   ;;  %v1337_v61 = vld [vmem:[#allocation5 + $0x130] sm:$0xff]  }
  0x32   :  { %1162 = vmatprep.subr.bf16.mxu1 %v1461_v0  ;;  %v1338_v62 = vld [vmem:[#allocation5 + $0x128] sm:$0xff]   ;;  %v1339_v63 = vld [vmem:[#allocation5 + $0x120] sm:$0xff]   ;;  %v1341_v2 = vld [vmem:[#allocation5 + $0x110] sm:$0xff]  }
  0x33   :  { %1143 = vmatpush3.bf16.msra.mxu0 %v1307_v7  ;;  %v1010_v3 = vld [vmem:[#allocation7 + $0x2] ss:$0 sm:$0xff]  ;;  %v1342_v12 = vld [vmem:[#allocation5 + $0x108] sm:$0xff]   ;;  %v1344_v14 = vld [vmem:[#allocation5 + $0x178] sm:$0xff]  }
  0x34   :  { %1144 = vmatprep.subr.bf16.mxu0 %v1461_v0  ;;  %v1343_v13 = vld [vmem:[#allocation5 + $0x100] sm:$0xff]  }
  0x35   :  { %1163 = vmatpush3.bf16.msra.mxu1 %v1315_v15  ;;  %v1345_v15 = vld [vmem:[#allocation5 + $0x170] sm:$0xff]  }
  0x36   :  { %1164 = vmatprep.subr.bf16.mxu1 %v1461_v0 }
  0x37   :  { %1145 = vmatpush3.bf16.msra.mxu0 %v1308_v8 }
  0x38   :  { %1146 = vmatprep.subr.bf16.mxu0 %v1461_v0 }
  0x39   :  { %1165 = vmatpush3.bf16.msra.mxu1 %v1316_v16  ;;  %v1346_v16 = vld [vmem:[#allocation5 + $0x168] sm:$0xff]  }
  0x3a   :  { %1166 = vmatprep.subr.bf16.mxu1 %v1461_v0 }
  0x3b   :  { %1147 = vmatpush3.bf16.msra.mxu0 %v1309_v9 }
  0x3c   :  { %1148 = vmatprep.subr.bf16.mxu0 %v1461_v0 }
  0x3d   :  { %1167 = vmatpush3.bf16.msra.mxu1 %v1317_v17  ;;  %v1347_v17 = vld [vmem:[#allocation5 + $0x160] sm:$0xff]  }
  0x3e   :  { %1168 = vmatprep.subr.bf16.mxu1 %v1461_v0 }
  0x3f   :  { %1149 = vmatpush3.bf16.msra.mxu0 %v1310_v10 }
  0x40   :  { %1150 = vmatprep.subr.bf16.mxu0 %v1461_v0 }
  0x41   :  { %1169 = vmatpush3.bf16.msra.mxu1 %v1318_v24 }
  0x42   :  { %1170 = vmatprep.subr.bf16.mxu1 %v1461_v0 }
  0x43   :  { %1151 = vmatpush3.bf16.msra.mxu0 %v1311_v11 }
  0x44   :  { %1176 = vmatprep.subr.bf16.mxu0 %v1461_v0 }
  0x45   :  { %1171 = vmatpush3.bf16.msra.mxu1 %v1319_v25 }
  0x46   :  { %1196 = vmatprep.subr.bf16.mxu1 %v1461_v0 }
  0xb2   :  { %v58_v18 = vpop.xlane.xlu0 %57 }
  0xb3   :  { %v60_v19 = vmul.f32 0.0078125, %v58_v18  ;;  %v1348_v18 = vld [vmem:[#allocation5 + $0x158] sm:$0xff]  }
  0xb5   :  { %v61_v20 = vadd.f32 1e-08, %v60_v19  ;;  %v1349_v19 = vld [vmem:[#allocation5 + $0x150] sm:$0xff]  }
  0xb7   :  { %1368 = vrsqrt.f32 %v61_v20  ;;  %v1019_v20 = vld [vmem:[#allocation7 + $0x3] ss:$0 sm:$0xff] }
  0xc4   :  { %v1369_v21 = vpop.eup %1368 }
  0xc5   :  { %v63_v22 = vmul.f32 %v1369_v21, %v53_v1  ;;  %v1340_v1 = vld [vmem:[#allocation5 + $0x118] sm:$0xff]  }
  0xc7   :  { %v64_v23 = vpack.c.bf16 %v63_v22, %v63_v22 }
  0xc9   :  { %1153 = vmatmul.mubr.bf16.vlgmr.msra.gmra.mxu0 %v64_v23 }
  0xca   :  { %1192 = vmatprep.mubr.msk.bf16.mxu0 %vm1462_vm1, %v1461_v0  ;;  %1177 = vmatpush3.bf16.msra.mxu0 %v1320_v26 }
  0xcb   :  { %1178 = vmatprep.subr.bf16.mxu0 %v1461_v0 }
  0xce   :  { %1179 = vmatpush3.bf16.msra.mxu0 %v1321_v27 }
  0xcf   :  { %1180 = vmatprep.subr.bf16.mxu0 %v1461_v0 }
  0xd2   :  { %1181 = vmatpush3.bf16.msra.mxu0 %v1322_v28 }
  0xd3   :  { %1182 = vmatprep.subr.bf16.mxu0 %v1461_v0 }
  0xd6   :  { %1183 = vmatpush3.bf16.msra.mxu0 %v1323_v29  ;;  %v1350_v29 = vld [vmem:[#allocation5 + $0x148] sm:$0xff]  }
  0xd7   :  { %1184 = vmatprep.subr.bf16.mxu0 %v1461_v0 }
  0xda   :  { %1185 = vmatpush3.bf16.msra.mxu0 %v1324_v30  ;;  %v1351_v30 = vld [vmem:[#allocation5 + $0x140] sm:$0xff]  }
  0xdb   :  { %1186 = vmatprep.subr.bf16.mxu0 %v1461_v0 }
  0xde   :  { %1187 = vmatpush3.bf16.msra.mxu0 %v1325_v31  ;;  %v1352_v31 = vld [vmem:[#allocation5 + $0x1b8] sm:$0xff]  }
  0xdf   :  { %1188 = vmatprep.subr.bf16.mxu0 %v1461_v0 }
  0xe2   :  { %1189 = vmatpush3.bf16.msra.mxu0 %v1326_v41 }
  0xe3   :  { %1190 = vmatprep.subr.bf16.mxu0 %v1461_v0 }
  0xe6   :  { %1191 = vmatpush3.bf16.msra.mxu0 %v1327_v42 }
  0xe7   :  { %1216 = vmatprep.subr.bf16.mxu0 %v1461_v0 }
 0x189   :  { %v168_v33 = vpop.f32.mrf.mxu0 }
 0x18a   :  { %v169_v34 = vadd.f32 %v992_v32, %v168_v33  ;;  %v1353_v32 = vld [vmem:[#allocation5 + $0x1b0] sm:$0xff]   ;;  %v1354_v33 = vld [vmem:[#allocation5 + $0x1a8] sm:$0xff]  }
 0x18b   :  { %v1154_v35 = vpop.f32.mrf.mxu0 }
 0x18c   :  { %vm174_vm2 = vcmp.ge.f32.partialorder %v169_v34, 0.0  ;;  %v175_v36 = vmul.f32 512.0, %v169_v34  ;;  %v1356_v35 = vld [vmem:[#allocation5 + $0x198] sm:$0xff]  }
 0x18d   :  { %v171_v37 = vpop.f32.mrf.mxu0 }
 0x18e   :  { %v176_v38 = vsel %vm174_vm2, %v169_v34, %v175_v36  ;;  %v1355_v34 = vld [vmem:[#allocation5 + $0x1a0] sm:$0xff]   ;;  %v1357_v36 = vld [vmem:[#allocation5 + $0x190] sm:$0xff]  }
 0x18f   :  { %v1155_v39 = vpop.f32.mrf.mxu0  ;;  %v177_v40 = vpack.c.bf16 %v176_v38, %v176_v38  ;;  %v1028_v37 = vld [vmem:[#allocation7 + $0x4] ss:$0 sm:$0xff] }
 0x191   :  { %1173 = vmatmul.mubr.bf16.vlgmr.msra.gmra.mxu1 %v177_v40 }
 0x192   :  { %1212 = vmatprep.mubr.msk.bf16.mxu1 %vm1462_vm1, %v1461_v0  ;;  %1197 = vmatpush3.bf16.msra.mxu1 %v1328_v43 }
 0x193   :  { %1198 = vmatprep.subr.bf16.mxu1 %v1461_v0 }
 0x196   :  { %1199 = vmatpush3.bf16.msra.mxu1 %v1329_v44 }
 0x197   :  { %1200 = vmatprep.subr.bf16.mxu1 %v1461_v0 }
 0x19a   :  { %1201 = vmatpush3.bf16.msra.mxu1 %v1330_v45 }
 0x19b   :  { %1202 = vmatprep.subr.bf16.mxu1 %v1461_v0 }
 0x19e   :  { %1203 = vmatpush3.bf16.msra.mxu1 %v1331_v46  ;;  %v1358_v46 = vld [vmem:[#allocation5 + $0x188] sm:$0xff]  }
 0x19f   :  { %1204 = vmatprep.subr.bf16.mxu1 %v1461_v0 }
 0x1a2   :  { %1205 = vmatpush3.bf16.msra.mxu1 %v1332_v47  ;;  %v1359_v47 = vld [vmem:[#allocation5 + $0x180] sm:$0xff]  }
 0x1a3   :  { %1206 = vmatprep.subr.bf16.mxu1 %v1461_v0 }
 0x1a6   :  { %1207 = vmatpush3.bf16.msra.mxu1 %v1333_v48  ;;  %v1360_v48 = vld [vmem:[#allocation5 + $0x1f8] sm:$0xff]  }
 0x1a7   :  { %1208 = vmatprep.subr.bf16.mxu1 %v1461_v0 }
 0x1aa   :  { %1209 = vmatpush3.bf16.msra.mxu1 %v1334_v58 }
 0x1ab   :  { %1210 = vmatprep.subr.bf16.mxu1 %v1461_v0 }
 0x1ae   :  { %1211 = vmatpush3.bf16.msra.mxu1 %v1335_v59 }
 0x1af   :  { %1236 = vmatprep.subr.bf16.mxu1 %v1461_v0 }
 0x251   :  { %v282_v50 = vpop.f32.mrf.mxu1 }
 0x252   :  { %v283_v51 = vadd.f32 %v1001_v49, %v282_v50  ;;  %v1361_v49 = vld [vmem:[#allocation5 + $0x1f0] sm:$0xff]   ;;  %v1362_v50 = vld [vmem:[#allocation5 + $0x1e8] sm:$0xff]  }
 0x253   :  { %v1174_v52 = vpop.f32.mrf.mxu1 }
 0x254   :  { %vm288_vm3 = vcmp.ge.f32.partialorder %v283_v51, 0.0  ;;  %v289_v53 = vmul.f32 512.0, %v283_v51  ;;  %v1364_v52 = vld [vmem:[#allocation5 + $0x1d8] sm:$0xff]  }
 0x255   :  { %v285_v54 = vpop.f32.mrf.mxu1 }
 0x256   :  { %v290_v55 = vsel %vm288_vm3, %v283_v51, %v289_v53  ;;  %v1363_v51 = vld [vmem:[#allocation5 + $0x1e0] sm:$0xff]   ;;  %v1365_v53 = vld [vmem:[#allocation5 + $0x1d0] sm:$0xff]  }
 0x257   :  { %v291_v56 = vpack.c.bf16 %v290_v55, %v290_v55  ;;  %v1175_v57 = vpop.f32.mrf.mxu1  ;;  %v1037_v54 = vld [vmem:[#allocation7 + $0x5] ss:$0 sm:$0xff] }
 0x259   :  { %1193 = vmatmul.mubr.bf16.vlgmr.msra.gmra.mxu0 %v291_v56 }
 0x25a   :  { %1232 = vmatprep.mubr.msk.bf16.mxu0 %vm1462_vm1, %v1461_v0  ;;  %1217 = vmatpush3.bf16.msra.mxu0 %v1336_v60 }
 0x25b   :  { %1218 = vmatprep.subr.bf16.mxu0 %v1461_v0 }
 0x25e   :  { %1219 = vmatpush3.bf16.msra.mxu0 %v1337_v61 }
 0x25f   :  { %1220 = vmatprep.subr.bf16.mxu0 %v1461_v0 }
 0x262   :  { %1221 = vmatpush3.bf16.msra.mxu0 %v1338_v62 }
 0x263   :  { %1222 = vmatprep.subr.bf16.mxu0 %v1461_v0 }
 0x266   :  { %1223 = vmatpush3.bf16.msra.mxu0 %v1339_v63  ;;  %v1366_v63 = vld [vmem:[#allocation5 + $0x1c8] sm:$0xff]  }
 0x267   :  { %1224 = vmatprep.subr.bf16.mxu0 %v1461_v0 }
 0x26a   :  { %1225 = vmatpush3.bf16.msra.mxu0 %v1340_v1  ;;  %v1367_v1 = vld [vmem:[#allocation5 + $0x1c0] sm:$0xff]  }
 0x26b   :  { %1226 = vmatprep.subr.bf16.mxu0 %v1461_v0 }
 0x26e   :  { %1227 = vmatpush3.bf16.msra.mxu0 %v1341_v2  ;;  %v1046_v2 = vld [vmem:[#allocation7 + $0x6] ss:$0 sm:$0xff] }
 0x26f   :  { %1228 = vmatprep.subr.bf16.mxu0 %v1461_v0 }
 0x272   :  { %1229 = vmatpush3.bf16.msra.mxu0 %v1342_v12 }
 0x273   :  { %1230 = vmatprep.subr.bf16.mxu0 %v1461_v0 }
 0x276   :  { %1231 = vmatpush3.bf16.msra.mxu0 %v1343_v13 }
 0x277   :  { %1256 = vmatprep.subr.bf16.mxu0 %v1461_v0 }
 0x319   :  { %v396_v4 = vpop.f32.mrf.mxu0 }
 0x31a   :  { %v397_v5 = vadd.f32 %v1010_v3, %v396_v4 }
 0x31b   :  { %v1194_v6 = vpop.f32.mrf.mxu0 }
 0x31c   :  { %vm402_vm4 = vcmp.ge.f32.partialorder %v397_v5, 0.0  ;;  %v403_v7 = vmul.f32 512.0, %v397_v5 }
 0x31d   :  { %v399_v8 = vpop.f32.mrf.mxu0 }
 0x31e   :  { %v404_v9 = vsel %vm402_vm4, %v397_v5, %v403_v7 }
 0x31f   :  { %v405_v10 = vpack.c.bf16 %v404_v9, %v404_v9  ;;  %v1195_v11 = vpop.f32.mrf.mxu0 }
 0x320   :  { %v1055_v11 = vld [vmem:[#allocation7 + $0x7] ss:$0 sm:$0xff] }
 0x321   :  { %1213 = vmatmul.mubr.bf16.vlgmr.msra.gmra.mxu1 %v405_v10 }
 0x322   :  { %1252 = vmatprep.mubr.msk.bf16.mxu1 %vm1462_vm1, %v1461_v0  ;;  %1237 = vmatpush3.bf16.msra.mxu1 %v1344_v14 }
 0x323   :  { %1238 = vmatprep.subr.bf16.mxu1 %v1461_v0 }
 0x326   :  { %1239 = vmatpush3.bf16.msra.mxu1 %v1345_v15 }
 0x327   :  { %1240 = vmatprep.subr.bf16.mxu1 %v1461_v0 }
 0x32a   :  { %1241 = vmatpush3.bf16.msra.mxu1 %v1346_v16 }
 0x32b   :  { %1242 = vmatprep.subr.bf16.mxu1 %v1461_v0 }
 0x32e   :  { %1243 = vmatpush3.bf16.msra.mxu1 %v1347_v17 }
 0x32f   :  { %1244 = vmatprep.subr.bf16.mxu1 %v1461_v0 }
 0x332   :  { %1245 = vmatpush3.bf16.msra.mxu1 %v1348_v18 }
 0x333   :  { %1246 = vmatprep.subr.bf16.mxu1 %v1461_v0 }
 0x336   :  { %1247 = vmatpush3.bf16.msra.mxu1 %v1349_v19 }
 0x337   :  { %1248 = vmatprep.subr.bf16.mxu1 %v1461_v0 }
 0x33a   :  { %1249 = vmatpush3.bf16.msra.mxu1 %v1350_v29 }
 0x33b   :  { %1250 = vmatprep.subr.bf16.mxu1 %v1461_v0 }
 0x33e   :  { %1251 = vmatpush3.bf16.msra.mxu1 %v1351_v30 }
 0x33f   :  { %1276 = vmatprep.subr.bf16.mxu1 %v1461_v0 }
 0x3e1   :  { %v510_v21 = vpop.f32.mrf.mxu1 }
 0x3e2   :  { %v511_v22 = vadd.f32 %v1019_v20, %v510_v21 }
 0x3e3   :  { %v1214_v23 = vpop.f32.mrf.mxu1 }
 0x3e4   :  { %vm516_vm5 = vcmp.ge.f32.partialorder %v511_v22, 0.0  ;;  %v517_v24 = vmul.f32 512.0, %v511_v22 }
 0x3e5   :  { %v513_v25 = vpop.f32.mrf.mxu1 }
 0x3e6   :  { %v518_v26 = vsel %vm516_vm5, %v511_v22, %v517_v24 }
 0x3e7   :  { %v519_v27 = vpack.c.bf16 %v518_v26, %v518_v26  ;;  %v1215_v28 = vpop.f32.mrf.mxu1 }
 0x3e9   :  { %1233 = vmatmul.mubr.bf16.vlgmr.msra.gmra.mxu0 %v519_v27 }
 0x3ea   :  { %1272 = vmatprep.mubr.msk.bf16.mxu0 %vm1462_vm1, %v1461_v0  ;;  %1257 = vmatpush3.bf16.msra.mxu0 %v1352_v31 }
 0x3eb   :  { %1258 = vmatprep.subr.bf16.mxu0 %v1461_v0 }
 0x3ee   :  { %1259 = vmatpush3.bf16.msra.mxu0 %v1353_v32 }
 0x3ef   :  { %1260 = vmatprep.subr.bf16.mxu0 %v1461_v0 }
 0x3f2   :  { %1261 = vmatpush3.bf16.msra.mxu0 %v1354_v33 }
 0x3f3   :  { %1262 = vmatprep.subr.bf16.mxu0 %v1461_v0 }
 0x3f6   :  { %1263 = vmatpush3.bf16.msra.mxu0 %v1355_v34 }
 0x3f7   :  { %1264 = vmatprep.subr.bf16.mxu0 %v1461_v0 }
 0x3fa   :  { %1265 = vmatpush3.bf16.msra.mxu0 %v1356_v35 }
 0x3fb   :  { %1266 = vmatprep.subr.bf16.mxu0 %v1461_v0 }
 0x3fe   :  { %1267 = vmatpush3.bf16.msra.mxu0 %v1357_v36 }
 0x3ff   :  { %1268 = vmatprep.subr.bf16.mxu0 %v1461_v0 }
 0x402   :  { %1269 = vmatpush3.bf16.msra.mxu0 %v1358_v46 }
 0x403   :  { %1270 = vmatprep.subr.bf16.mxu0 %v1461_v0 }
 0x406   :  { %1271 = vmatpush3.bf16.msra.mxu0 %v1359_v47 }
 0x4a9   :  { %v624_v38 = vpop.f32.mrf.mxu0 }
 0x4aa   :  { %v625_v39 = vadd.f32 %v1028_v37, %v624_v38 }
 0x4ab   :  { %v1234_v40 = vpop.f32.mrf.mxu0 }
 0x4ac   :  { %vm630_vm6 = vcmp.ge.f32.partialorder %v625_v39, 0.0  ;;  %v631_v41 = vmul.f32 512.0, %v625_v39 }
 0x4ad   :  { %v627_v42 = vpop.f32.mrf.mxu0 }
 0x4ae   :  { %v632_v43 = vsel %vm630_vm6, %v625_v39, %v631_v41 }
 0x4af   :  { %v633_v44 = vpack.c.bf16 %v632_v43, %v632_v43  ;;  %v1235_v45 = vpop.f32.mrf.mxu0 }
 0x4b1   :  { %1253 = vmatmul.mubr.bf16.vlgmr.msra.gmra.mxu1 %v633_v44 }
 0x4b2   :  { %1292 = vmatprep.mubr.msk.bf16.mxu1 %vm1462_vm1, %v1461_v0  ;;  %1277 = vmatpush3.bf16.msra.mxu1 %v1360_v48 }
 0x4b3   :  { %1278 = vmatprep.subr.bf16.mxu1 %v1461_v0 }
 0x4b6   :  { %1279 = vmatpush3.bf16.msra.mxu1 %v1361_v49 }
 0x4b7   :  { %1280 = vmatprep.subr.bf16.mxu1 %v1461_v0 }
 0x4ba   :  { %1281 = vmatpush3.bf16.msra.mxu1 %v1362_v50 }
 0x4bb   :  { %1282 = vmatprep.subr.bf16.mxu1 %v1461_v0 }
 0x4be   :  { %1283 = vmatpush3.bf16.msra.mxu1 %v1363_v51 }
 0x4bf   :  { %1284 = vmatprep.subr.bf16.mxu1 %v1461_v0 }
 0x4c2   :  { %1285 = vmatpush3.bf16.msra.mxu1 %v1364_v52 }
 0x4c3   :  { %1286 = vmatprep.subr.bf16.mxu1 %v1461_v0 }
 0x4c6   :  { %1287 = vmatpush3.bf16.msra.mxu1 %v1365_v53 }
 0x4c7   :  { %1288 = vmatprep.subr.bf16.mxu1 %v1461_v0 }
 0x4ca   :  { %1289 = vmatpush3.bf16.msra.mxu1 %v1366_v63 }
 0x4cb   :  { %1290 = vmatprep.subr.bf16.mxu1 %v1461_v0 }
 0x4ce   :  { %1291 = vmatpush3.bf16.msra.mxu1 %v1367_v1 }
 0x571   :  { %v738_v55 = vpop.f32.mrf.mxu1 }
 0x572   :  { %v739_v56 = vadd.f32 %v1037_v54, %v738_v55 }
 0x573   :  { %v1254_v57 = vpop.f32.mrf.mxu1 }
 0x574   :  { %vm744_vm7 = vcmp.ge.f32.partialorder %v739_v56, 0.0  ;;  %v745_v58 = vmul.f32 512.0, %v739_v56 }
 0x575   :  { %v741_v59 = vpop.f32.mrf.mxu1 }
 0x576   :  { %v746_v60 = vsel %vm744_vm7, %v739_v56, %v745_v58 }
 0x577   :  { %v747_v61 = vpack.c.bf16 %v746_v60, %v746_v60  ;;  %v1255_v62 = vpop.f32.mrf.mxu1 }
 0x579   :  { %1273 = vmatmul.mubr.bf16.vlgmr.msra.gmra.mxu0 %v747_v61 }
 0x639   :  { %v852_v3 = vpop.f32.mrf.mxu0 }
 0x63a   :  { %v853_v4 = vadd.f32 %v1046_v2, %v852_v3 }
 0x63b   :  { %v1274_v5 = vpop.f32.mrf.mxu0 }
 0x63c   :  { %vm858_vm8 = vcmp.ge.f32.partialorder %v853_v4, 0.0  ;;  %v859_v6 = vmul.f32 512.0, %v853_v4 }
 0x63d   :  { %v855_v7 = vpop.f32.mrf.mxu0 }
 0x63e   :  { %v860_v8 = vsel %vm858_vm8, %v853_v4, %v859_v6 }
 0x63f   :  { %v861_v9 = vpack.c.bf16 %v860_v8, %v860_v8  ;;  %v1275_v10 = vpop.f32.mrf.mxu0 }
 0x641   :  { %1293 = vmatmul.mubr.bf16.vlgmr.msra.gmra.mxu1 %v861_v9 }
 0x701   :  { %v966_v12 = vpop.f32.mrf.mxu1 }
 0x702   :  { %v967_v13 = vadd.f32 %v1055_v11, %v966_v12 }
 0x703   :  { %v1294_v14 = vpop.f32.mrf.mxu1 }
 0x704   :  { %v973_v0 = vmul.f32 512.0, %v967_v13  ;;  %vm972_vm9 = vcmp.ge.f32.partialorder %v967_v13, 0.0 }
 0x705   :  { %v969_v15 = vpop.f32.mrf.mxu1 }
 0x706   :  { %v974_v16 = vsel %vm972_vm9, %v967_v13, %v973_v0 }
 0x707   :  { %v1295_v17 = vpop.f32.mrf.mxu1  ;;  %975 = vst [vmem:[#allocation8] sm:$0xf] %v974_v16 }
 0x708   :  { %1441 = shalt.err (!%p1438_p5)
}
 0x709   :  { %985 = dma.vmem_to_hbm [thread:$0]  %s983_s2, 64, %s1579_s3, [#allocation4]  }
 0x70a   :  { %1454 = dma.done.wait [#allocation4], 64  }
 0x70b   :  { %1455 = vsyncadd [#allocation4], 4294967232 }
 0x70c   :  { %989 = vsyncpa [#allocation3], 1 }
 0x70d   :  { %990 = vsyncpa [#allocation6], 1 }
 0x70e   :  { %991 = vsyncpa [#allocation4], 1 }

</bundles_post_ra>
